<compile_context>
chip_gen: v7x
topology: tpu7x:2x2x1
jax: 0.10.0
libtpu: 0.0.40
codegen_flags: <defaults>
</compile_context>

<pallas_src>
import math

import jax
import jax.numpy as jnp
from jax.experimental import pallas as pl
from jax.experimental.pallas import tpu as pltpu

# --- hyperparameters (small, consistent with the LDAfomer usage) -------------
SEQ_LEN = 16
D_MODEL = 32
MAX_LEN = 5000   # torch default; rows beyond S never reach the output.


def pos_emb_kernel(x_hbm_ref, o_ref):
    # x is only consulted for its (static) sequence length; its values are
    # never read, so it stays in HBM (memory_space=pl.ANY) and costs no DMA.
    del x_hbm_ref
    S, D = o_ref.shape
    pos = jax.lax.broadcasted_iota(jnp.int32, (S, D), 0).astype(jnp.float32)
    lane = jax.lax.broadcasted_iota(jnp.int32, (S, D), 1)
    odd = jnp.bitwise_and(lane, 1)                        # 1 on "cos" lanes
    even_idx = (lane - odd).astype(jnp.float32)           # 2 * (lane // 2)
    # div_term, per-lane: exp(2*(j//2) * -(ln(10000)/d_model))
    inv_freq = jnp.exp(even_idx * (-(math.log(10000.0) / D)))
    # Phase-shift odd lanes by pi/2 so one sin covers the sin/cos interleave.
    angle = pos * inv_freq + odd.astype(jnp.float32) * (math.pi / 2.0)
    o_ref[...] = jnp.sin(angle)


@jax.jit
def positional_embedding_forward(x):
    """Equivalent of positionalEmbedding.forward(x): (1, x.shape[1], d_model)."""
    S = x.shape[1]
    table = pl.pallas_call(
        pos_emb_kernel,
        out_shape=jax.ShapeDtypeStruct((S, D_MODEL), jnp.float32),
        in_specs=[pl.BlockSpec(memory_space=pl.ANY)],     # shape-only input
        out_specs=pl.BlockSpec(memory_space=pltpu.MemorySpace.VMEM),
    )(x)
    return table[None, :, :]                              # (1, S, d_model)


def reference_forward(x, max_len=MAX_LEN, d_model=D_MODEL):
    """Pure-JAX replica of the PyTorch module (build full buffer, then slice)."""
    position = jnp.arange(0, max_len, dtype=jnp.float32)[:, None]
    div_term = jnp.exp(
        jnp.arange(0, d_model, 2, dtype=jnp.float32)
        * (-(math.log(10000.0) / d_model)))
    pe = jnp.zeros((max_len, d_model), jnp.float32)
    pe = pe.at[:, 0::2].set(jnp.sin(position * div_term))
    pe = pe.at[:, 1::2].set(jnp.cos(position * div_term))
    return pe[None, :x.shape[1], :]


if __name__ == "__main__":
    key = jax.random.PRNGKey(0)
    B = 2
    x = jax.random.normal(key, (B, SEQ_LEN, D_MODEL), jnp.float32)

    out = positional_embedding_forward(x)
    out = jax.block_until_ready(out)

    ref = reference_forward(x)
    assert out.shape == (1, SEQ_LEN, D_MODEL), out.shape
    if not jnp.allclose(out, ref, atol=1e-4, rtol=1e-4):
        max_err = jnp.max(jnp.abs(out - ref))
        raise AssertionError(f"Pallas kernel mismatch: max abs err = {max_err}")
    print("KERNEL_OK")
</pallas_src>

<mosaic_0001>
module attributes {stable_mosaic.version = 11 : i64} {
  func.func @pos_emb_kernel(%arg0: memref<2x16x32xf32, #tpu.memory_space<any>>, %arg1: memref<16x32xf32, #tpu.memory_space<vmem>>) attributes {dimension_semantics = [], scalar_prefetch = 0 : i64, scratch_operands = 0 : i64, tpu.core_type = #tpu.core_type<tc>} {
    %0 = tpu.iota {dimensions = array<i32: 0>} : vector<16x32xi32>
    %1 = arith.sitofp %0 : vector<16x32xi32> to vector<16x32xf32>
    %2 = tpu.iota {dimensions = array<i32: 1>} : vector<16x32xi32>
    %c1_i32 = arith.constant 1 : i32
    %3 = vector.broadcast %c1_i32 : i32 to vector<16x32xi32>
    %4 = arith.andi %2, %3 : vector<16x32xi32>
    %5 = arith.subi %2, %4 : vector<16x32xi32>
    %6 = arith.sitofp %5 : vector<16x32xi32> to vector<16x32xf32>
    %cst = arith.constant -0.287823141 : f32
    %7 = vector.broadcast %cst : f32 to vector<16x32xf32>
    %8 = arith.mulf %6, %7 : vector<16x32xf32>
    %9 = math.exp %8 : vector<16x32xf32>
    %10 = arith.mulf %1, %9 : vector<16x32xf32>
    %11 = arith.sitofp %4 : vector<16x32xi32> to vector<16x32xf32>
    %cst_0 = arith.constant 1.57079637 : f32
    %12 = vector.broadcast %cst_0 : f32 to vector<16x32xf32>
    %13 = arith.mulf %11, %12 : vector<16x32xf32>
    %14 = arith.addf %10, %13 : vector<16x32xf32>
    %15 = math.sin %14 : vector<16x32xf32>
    %c0 = arith.constant 0 : index
    %c0_1 = arith.constant 0 : index
    %16 = vector.load %arg1[%c0, %c0_1] : memref<16x32xf32, #tpu.memory_space<vmem>>, vector<16x32xf32>
    tpu.vector_store %arg1[%c0, %c0_1], %15 {strides = array<i32>} : memref<16x32xf32, #tpu.memory_space<vmem>>, vector<16x32xf32>,
    return
  }
}

</mosaic_0001>

<bundles_post_ra>
// kernel: positional_embedding_forward.1
= control target key start
LH: loop header
LB: loop body
LE: loop exit
PB: predicated region body
PF: predicated region fallthrough
CT: control target
= control target key end

     0   :  { %6 = vsyncpa [#allocation3], 0  ;;  %v7_v0 = vlaneseq  ;;  %v312_v40 = vmov 683565275   ;;  %v313_v42 = vmov 2475754826   ;;  %s415_s0 = inlined_call_operand.hbm [shape: f32[2,16,32], index: 0, kind: input, shape index: {}]   ;;  %s416_s1 = inlined_call_operand.hbm [shape: f32[16,32], index: 1, kind: output, shape index: {}]  }
   0x1   :  { %v314_v44 = vmov 2131351028   ;;  %v315_v46 = vmov 2102212464   ;;  %v316_v48 = vmov 920167782  }
   0x2   :  { %v13_v1 = vand.u32 127, %v7_v0  ;;  %v8_v7 = vshrl.u32 %v7_v0, 7  ;;  %v317_v56 = vmov 1326507024   ;;  %s318_s0 = smov [#allocation2]  }
   0x3   :  { %s242_s6 = sshll.u32 %s318_s0, 4  ;;  %s243_s6 = int_to_ptr.vmem [resolvable:$true] %s242_s6 }
   0x4   :  { %v14_v2 = vand.u32 1, %v13_v1  ;;  %v9_v8 = vadd.s32 8, %v8_v7  ;;  %v10_v10 = vcvt.s32.f32 %v8_v7  ;;  %s288_s7 = scalar_lea.vmem %s243_s6, 256  ;;  %p293_p1 = scmp.lt.s32.totalorder %s243_s6, %s243_s6 }
   0x5   :  { %p289_p0 = scmp.ne.s32.totalorder %s243_s6, %s288_s7  ;;  %p294_p2 = scmp.lt.s32.totalorder %s288_s7, %s288_s7 }
   0x6   :  { %v15_v3 = vsub.s32 %v13_v1, %v14_v2  ;;  %v22_v9 = vcvt.s32.f32 %v14_v2  ;;  %v11_v11 = vcvt.s32.f32 %v9_v8 }
   0x7   :  { %p295_p3 = por %p294_p2, %p293_p1 }
   0x8   :  { %v16_v4 = vcvt.s32.f32 %v15_v3  ;;  %v23_v12 = vmul.f32 1.5707964, %v22_v9 }
   0x9   :  { %p296_p4 = pnand %p295_p3, %p289_p0 }
   0xa   :  { %v17_v5 = vmul.f32 -0.28782314, %v16_v4 }
   0xc   :  { %v18_v6 = vmul.f32 1.442695, %v17_v5 }
   0xe   :  { %278 = vpow2.f32 %v18_v6 }
  0x18   :  { %v279_v13 = vpop.eup %278 }
  0x19   :  { %v20_v14 = vmul.f32 %v279_v13, %v10_v10  ;;  %v21_v15 = vmul.f32 %v279_v13, %v11_v11 }
  0x1b   :  { %v331_v16 = vadd.f32 %v23_v12, %v20_v14  ;;  %v333_v17 = vadd.f32 %v23_v12, %v21_v15 }
  0x1d   :  { %v26_v18 = vand.u32 2147483647, %v331_v16  ;;  %v29_v19 = vand.u32 2139095040, %v331_v16  ;;  %v130_v20 = vand.u32 2147483647, %v333_v17  ;;  %v133_v21 = vand.u32 2139095040, %v333_v17 }
  0x1e   :  { %vm28_vm14 = vcmp.lt.s32.totalorder %v331_v16, 0 }
  0x1f   :  { %v30_v22 = vshrl.u32 %v29_v19, 23  ;;  %v33_v23 = vand.u32 8388607, %v26_v18  ;;  %v134_v24 = vshrl.u32 %v133_v21, 23  ;;  %v137_v25 = vand.u32 8388607, %v130_v20 }
  0x20   :  { %vm27_vm15 = vcmp.le.f32.partialorder %v26_v18, 0.7853982 }
  0x21   :  { %v253_v26 = vadd.s32 4294967169, %v30_v22  ;;  %v257_v27 = vadd.s32 4294967169, %v134_v24  ;;  %v34_v29 = vor.u32 8388608, %v33_v23  ;;  %v138_v30 = vor.u32 8388608, %v137_v25 }
  0x23   :  { %v36_v28 = vadd.s32 1, %v253_v26  ;;  %v140_v31 = vadd.s32 1, %v257_v27  ;;  %v343_v36 = vshll.u32 %v34_v29, 8  ;;  %v345_v38 = vshll.u32 %v138_v30, 8 }
  0x25   :  { %vm37_vm0 = vcmp.gt.s32.totalorder %v36_v28, 0  ;;  %vm141_vm1 = vcmp.gt.s32.totalorder %v140_v31, 0 }
  0x26   :  { %v38_v32 = vsel %vm37_vm0, %v36_v28, 0  ;;  %v142_v35 = vsel %vm141_vm1, %v140_v31, 0  ;;  %vm132_vm0 = vcmp.lt.s32.totalorder %v333_v17, 0  ;;  %vm131_vm1 = vcmp.le.f32.partialorder %v130_v20, 0.7853982 }
  0x27   :  { %v39_v33 = vshrl.u32 %v38_v32, 5  ;;  %v40_v34 = vand.u32 31, %v38_v32  ;;  %v144_v37 = vand.u32 31, %v142_v35  ;;  %v347_v50 = vshrl.u32 %v142_v35, 5 }
  0x29   :  { %v41_v39 = vsub.s32 32, %v40_v34  ;;  %v43_v41 = vshll.u32 %v312_v40, %v40_v34  ;;  %v46_v43 = vshll.u32 %v313_v42, %v40_v34  ;;  %v49_v45 = vshll.u32 %v314_v44, %v40_v34 }
  0x2a   :  { %v52_v47 = vshll.u32 %v315_v46, %v40_v34  ;;  %v55_v49 = vshll.u32 %v316_v48, %v40_v34  ;;  %vm58_vm2 = vcmp.lt.s32.totalorder %v39_v33, 1  ;;  %vm59_vm3 = vcmp.lt.s32.totalorder %v39_v33, 2 }
  0x2b   :  { %v42_v51 = vshrl.u32 %v312_v40, %v41_v39  ;;  %v44_v52 = vshrl.u32 %v313_v42, %v41_v39  ;;  %v47_v53 = vshrl.u32 %v314_v44, %v41_v39  ;;  %v50_v54 = vshrl.u32 %v315_v46, %v41_v39 }
  0x2c   :  { %v53_v55 = vshrl.u32 %v316_v48, %v41_v39  ;;  %v56_v57 = vshrl.u32 %v317_v56, %v41_v39  ;;  %vm61_vm4 = vcmp.lt.s32.totalorder %v39_v33, 4  ;;  %v145_v61 = vsub.s32 32, %v144_v37 }
  0x2d   :  { %v45_v58 = vor.u32 %v44_v52, %v43_v41  ;;  %v48_v59 = vor.u32 %v47_v53, %v46_v43  ;;  %v51_v60 = vor.u32 %v50_v54, %v49_v45  ;;  %vm60_vm5 = vcmp.lt.s32.totalorder %v39_v33, 3 }
  0x2e   :  { %v54_v62 = vor.u32 %v53_v55, %v52_v47  ;;  %v57_v63 = vor.u32 %v56_v57, %v55_v49  ;;  %v147_v0 = vshll.u32 %v312_v40, %v144_v37  ;;  %v150_v8 = vshll.u32 %v313_v42, %v144_v37 }
  0x2f   :  { %v62_v1 = vsel %vm58_vm2, %v42_v51, %v45_v58  ;;  %v63_v2 = vsel %vm61_vm4, %v51_v60, 2102212464  ;;  %v66_v3 = vsel %vm58_vm2, %v45_v58, %v48_v59  ;;  %v70_v4 = vsel %vm58_vm2, %v48_v59, %v51_v60 }
  0x30   :  { %v64_v5 = vsel %vm60_vm5, %v48_v59, %v63_v2  ;;  %v67_v6 = vsel %vm61_vm4, %v54_v62, 920167782  ;;  %v71_v7 = vsel %vm61_vm4, %v57_v63, 1326507024  ;;  %v146_v11 = vshrl.u32 %v312_v40, %v145_v61 }
  0x31   :  { %v68_v9 = vsel %vm60_vm5, %v51_v60, %v67_v6  ;;  %v72_v10 = vsel %vm60_vm5, %v54_v62, %v71_v7  ;;  %v148_v12 = vshrl.u32 %v313_v42, %v145_v61  ;;  %v65_v13 = vsel %vm59_vm3, %v62_v1, %v64_v5 }
  0x32   :  { %v69_v14 = vsel %vm59_vm3, %v66_v3, %v68_v9  ;;  %v73_v15 = vsel %vm59_vm3, %v70_v4, %v72_v10  ;;  %v151_v19 = vshrl.u32 %v314_v44, %v145_v61  ;;  %v153_v27 = vshll.u32 %v314_v44, %v144_v37 }
  0x33   :  { %v356_v21 = vmul.u32.u64.low %v343_v36, %v73_v15  ;;  %v357_v22 = vmul.u32.u64.high %v343_v36, %v73_v15, %v356_v21  ;;  %v360_v23 = vmul.u32.u64.low %v343_v36, %v69_v14  ;;  %v361_v24 = vmul.u32.u64.high %v343_v36, %v69_v14, %v360_v23 }
  0x34   :  { %v149_v25 = vor.u32 %v148_v12, %v147_v0  ;;  %v152_v26 = vor.u32 %v151_v19, %v150_v8  ;;  %v154_v28 = vshrl.u32 %v315_v46, %v145_v61  ;;  %v156_v29 = vshll.u32 %v315_v46, %v144_v37 }
  0x35   :  { %v157_v30 = vshrl.u32 %v316_v48, %v145_v61  ;;  %v159_v31 = vshll.u32 %v316_v48, %v144_v37  ;;  %v160_v32 = vshrl.u32 %v317_v56, %v145_v61  ;;  %v81_v33 = vmul.u32 %v343_v36, %v65_v13 }
  0x36   :  { %v155_v34 = vor.u32 %v154_v28, %v153_v27  ;;  %vm162_vm6 = vcmp.lt.s32.totalorder %v347_v50, 1  ;;  %vm163_vm7 = vcmp.lt.s32.totalorder %v347_v50, 2  ;;  %vm83_vm8 = vc.u32 %v357_v22, %v360_v23 }
  0x37   :  { %v84_v35 = vadd.s32 1, %v361_v24  ;;  %v158_v39 = vor.u32 %v157_v30, %v156_v29  ;;  %vm164_vm9 = vcmp.lt.s32.totalorder %v347_v50, 3  ;;  %v161_v40 = vor.u32 %v160_v32, %v159_v31 }
  0x38   :  { %vm165_vm10 = vcmp.lt.s32.totalorder %v347_v50, 4  ;;  %v166_v41 = vsel %vm162_vm6, %v146_v11, %v149_v25  ;;  %v170_v37 = vsel %vm162_vm6, %v149_v25, %v152_v26  ;;  %v174_v44 = vsel %vm162_vm6, %v152_v26, %v155_v34 }
  0x39   :  { %v85_v42 = vsel %vm83_vm8, %v84_v35, %v361_v24  ;;  %v167_v36 = vsel %vm165_vm10, %v155_v34, 2102212464  ;;  %v171_v43 = vsel %vm165_vm10, %v158_v39, 920167782  ;;  %v175_v48 = vsel %vm165_vm10, %v161_v40, 1326507024 }
  0x3a   :  { %v86_v45 = vadd.s32 %v85_v42, %v81_v33  ;;  %v168_v46 = vsel %vm164_vm9, %v152_v26, %v167_v36  ;;  %v172_v47 = vsel %vm164_vm9, %v155_v34, %v171_v43  ;;  %v176_v52 = vsel %vm164_vm9, %v158_v39, %v175_v48 }
  0x3b   :  { %v169_v49 = vsel %vm163_vm7, %v166_v41, %v168_v46  ;;  %v173_v51 = vsel %vm163_vm7, %v170_v37, %v172_v47  ;;  %v177_v54 = vsel %vm163_vm7, %v174_v44, %v176_v52  ;;  %v82_v9 = vadd.s32 %v360_v23, %v357_v22 }
  0x3c   :  { %v87_v53 = vadd.s32 536870912, %v86_v45  ;;  %v378_v55 = vmul.u32.u64.low %v345_v38, %v173_v51  ;;  %v379_v56 = vmul.u32.u64.high %v345_v38, %v173_v51, %v378_v55  ;;  %v185_v60 = vmul.u32 %v345_v38, %v169_v49 }
  0x3d   :  { %v382_v57 = vmul.u32.u64.low %v345_v38, %v177_v54  ;;  %v383_v58 = vmul.u32.u64.high %v345_v38, %v177_v54, %v382_v57  ;;  %vm118_vm5 = vweird.f32 %v331_v16  ;;  %vm234_vm6 = vcmask 261120  }
  0x3e   :  { %v88_v59 = vshrl.u32 %v87_v53, 30  ;;  %v188_v62 = vadd.s32 1, %v379_v56  ;;  %vm222_vm10 = vweird.f32 %v333_v17 }
  0x3f   :  { %vm187_vm11 = vc.u32 %v383_v58, %v378_v55  ;;  %v186_v29 = vadd.s32 %v378_v55, %v383_v58 }
  0x40   :  { %v89_v61 = vshll.u32 %v88_v59, 30  ;;  %v189_v50 = vsel %vm187_vm11, %v188_v62, %v379_v56  ;;  %v112_v22 = vsub.s32 4, %v88_v59 }
  0x41   :  { %v190_v0 = vadd.s32 %v189_v50, %v185_v60 }
  0x42   :  { %v90_v63 = vsub.s32 %v86_v45, %v89_v61  ;;  %v113_v41 = vsel %vm28_vm14, %v112_v22, %v88_v59 }
  0x43   :  { %v191_v2 = vadd.s32 536870912, %v190_v0  ;;  %v115_v44 = vsel %vm27_vm15, 0, %v113_v41 }
  0x44   :  { %v92_v1 = vsub.s32 0, %v90_v63  ;;  %v119_v49 = vadd.s32 3, %v115_v44 }
  0x45   :  { %v192_v4 = vshrl.u32 %v191_v2, 30 }
  0x46   :  { %v254_v3 = vmin.u32 %v92_v1, %v90_v63  ;;  %v120_v53 = vand.u32 3, %v119_v49 }
  0x47   :  { %v193_v6 = vshll.u32 %v192_v4, 30  ;;  %v216_v48 = vsub.s32 4, %v192_v4 }
  0x48   :  { %v94_v5 = vclz %v254_v3  ;;  %vm125_vm2 = vcmp.eq.s32.totalorder %v120_v53, 2  ;;  %vm122_vm3 = vcmp.eq.s32.totalorder %v120_v53, 0  ;;  %vm121_vm4 = vcmp.lt.s32.totalorder %v120_v53, 2 }
  0x49   :  { %v194_v8 = vsub.s32 %v190_v0, %v193_v6  ;;  %v217_v52 = vsel %vm132_vm0, %v216_v48, %v192_v4 }
  0x4a   :  { %v255_v7 = vadd.s32 4294967294, %v94_v5  ;;  %v219_v56 = vsel %vm131_vm1, 0, %v217_v52 }
  0x4b   :  { %v196_v10 = vsub.s32 0, %v194_v8  ;;  %v223_v60 = vadd.s32 3, %v219_v56 }
  0x4c   :  { %vm256_vm12 = vcmp.lt.s32.totalorder %v255_v7, 0 }
  0x4d   :  { %v97_v38 = vsel %vm256_vm12, 0, %v255_v7  ;;  %v258_v14 = vmin.u32 %v196_v10, %v194_v8  ;;  %v224_v50 = vand.u32 3, %v223_v60 }
  0x4e   :  { %v98_v11 = vsub.s32 32, %v97_v38  ;;  %v99_v12 = vshll.u32 %v90_v63, %v97_v38  ;;  %v102_v13 = vsub.s32 4294967266, %v97_v38 }
  0x4f   :  { %v198_v21 = vclz %v258_v14  ;;  %vm229_vm7 = vcmp.eq.s32.totalorder %v224_v50, 2  ;;  %vm226_vm8 = vcmp.eq.s32.totalorder %v224_v50, 0  ;;  %vm225_vm9 = vcmp.lt.s32.totalorder %v224_v50, 2 }
  0x50   :  { %v100_v15 = vshrl.u32 %v82_v9, %v98_v11  ;;  %v103_v19 = vadd.s32 127, %v102_v13 }
  0x51   :  { %v259_v26 = vadd.s32 4294967294, %v198_v21 }
  0x52   :  { %v101_v24 = vor.u32 %v100_v15, %v99_v12  ;;  %v104_v25 = vshll.u32 %v103_v19, 23 }
  0x53   :  { %vm260_vm13 = vcmp.lt.s32.totalorder %v259_v26, 0 }
  0x54   :  { %v105_v27 = vor.u32 4788187, %v104_v25  ;;  %v108_v28 = vcvt.s32.f32 %v101_v24  ;;  %v201_v23 = vsel %vm260_vm13, 0, %v259_v26 }
  0x55   :  { %v202_v31 = vsub.s32 32, %v201_v23  ;;  %v203_v32 = vshll.u32 %v194_v8, %v201_v23  ;;  %v206_v33 = vsub.s32 4294967266, %v201_v23 }
  0x56   :  { %v106_v30 = vand.u32 2147483647, %v105_v27 }
  0x57   :  { %v204_v35 = vshrl.u32 %v186_v29, %v202_v31  ;;  %v207_v39 = vadd.s32 127, %v206_v33 }
  0x58   :  { %v109_v34 = vmul.f32 %v108_v28, %v106_v30 }
  0x59   :  { %v205_v37 = vor.u32 %v204_v35, %v203_v32  ;;  %v208_v42 = vshll.u32 %v207_v39, 23 }
  0x5a   :  { %v110_v40 = vxor.u32 2147483648, %v109_v34 }
  0x5b   :  { %v209_v45 = vor.u32 4788187, %v208_v42  ;;  %v212_v46 = vcvt.s32.f32 %v205_v37 }
  0x5c   :  { %v111_v36 = vsel %vm28_vm14, %v110_v40, %v109_v34 }
  0x5d   :  { %v114_v43 = vsel %vm27_vm15, %v331_v16, %v111_v36  ;;  %v210_v47 = vand.u32 2147483647, %v209_v45 }
  0x5e   :  { %280 = vcosq.f32 %v114_v43 }
  0x5f   :  { %282 = vsinq.f32 %v114_v43  ;;  %v213_v51 = vmul.f32 %v212_v46, %v210_v47 }
  0x61   :  { %v214_v18 = vxor.u32 2147483648, %v213_v51 }
  0x63   :  { %v215_v54 = vsel %vm132_vm0, %v214_v18, %v213_v51 }
  0x64   :  { %v218_v55 = vsel %vm131_vm1, %v333_v17, %v215_v54 }
  0x65   :  { %284 = vcosq.f32 %v218_v55 }
  0x66   :  { %286 = vsinq.f32 %v218_v55 }
  0x68   :  { %v281_v57 = vpop.eup %280 }
  0x69   :  { %v283_v58 = vpop.eup %282  ;;  %v126_v59 = vxor.u32 2147483648, %v281_v57 }
  0x6a   :  { %v123_v61 = vxor.u32 2147483648, %v283_v58 }
  0x6b   :  { %v127_v20 = vsel %vm125_vm2, %v126_v59, %v283_v58 }
  0x6c   :  { %v124_v62 = vsel %vm122_vm3, %v281_v57, %v123_v61 }
  0x6d   :  { %v128_v63 = vsel %vm121_vm4, %v124_v62, %v127_v20 }
  0x6e   :  { %v129_v0 = vsel %vm118_vm5, nan, %v128_v63 }
  0x6f   :  { %235 = vst.msk [vmem:[#allocation2] sm:$0xff] %vm234_vm6, %v129_v0  ;;  %v285_v1 = vpop.eup %284 }
  0x70   :  { %v287_v2 = vpop.eup %286  ;;  %v230_v3 = vxor.u32 2147483648, %v285_v1 }
  0x71   :  { %v227_v4 = vxor.u32 2147483648, %v287_v2 }
  0x72   :  { %v231_v16 = vsel %vm229_vm7, %v230_v3, %v287_v2 }
  0x73   :  { %v228_v5 = vsel %vm226_vm8, %v285_v1, %v227_v4 }
  0x74   :  { %v232_v6 = vsel %vm225_vm9, %v228_v5, %v231_v16 }
  0x75   :  { %v233_v7 = vsel %vm222_vm10, nan, %v232_v6 }
  0x76   :  { %236 = vst.msk [vmem:[#allocation2 + $0x8] sm:$0xff] %vm234_vm6, %v233_v7 }
  0x77   :  { %299 = shalt.err (!%p296_p4)
}
  0x78   :  { %s300_s10 = scalar_lea.hbm %s416_s1, 256 }
  0x79   :  { %p301_p5 = scmp.ne.s32.totalorder %s416_s1, %s300_s10  ;;  %p304_p6 = scmp.lt.u32.totalorder %s300_s10, %s416_s1 }
  0x7b   :  { %p306_p7 = pnand %p304_p6, %p301_p5 }
  0x7d   :  { %309 = shalt.err (!%p306_p7)
}
  0x7e   :  { %s319_s15 = smov 128   ;;  %s320_s16 = smov 8  }
  0x7f   :  { %248 = dma.vmem_to_hbm [thread:$0]  %s243_s6, 256, %s416_s1, [#allocation3], %s319_s15, %s319_s15, %s320_s16  }
  0x80   :  { %310 = dma.done.wait [#allocation3], 256  }
  0x81   :  { %311 = vsyncadd [#allocation3], 4294967040 }
  0x82   :  { %252 = vsyncpa [#allocation3], 1 }

</bundles_post_ra>
